<compile_context>
chip_gen: v7x
topology: tpu7x:2x2x1
jax: 0.10.0
libtpu: 0.0.40
codegen_flags: <defaults>
</compile_context>

<pallas_src>
import time
import functools
import numpy as np
import jax
import jax.numpy as jnp
from jax import lax
from jax.experimental import pallas as pl
from jax.experimental.pallas import tpu as pltpu


# ----------------------------------------------------------------------------
# shared in-kernel helpers
# ----------------------------------------------------------------------------
def _softmax_last(x):
    m = jnp.max(x, axis=-1, keepdims=True)
    e = jnp.exp(x - m)
    return e / jnp.sum(e, axis=-1, keepdims=True)


def _max_argmax_last(x):
    """Max and first-occurrence argmax along the last axis (keepdims=True)."""
    mx = jnp.max(x, axis=-1, keepdims=True)
    iota = lax.broadcasted_iota(jnp.int32, x.shape, x.ndim - 1)
    idx = jnp.min(jnp.where(x >= mx, iota, x.shape[-1]), axis=-1, keepdims=True)
    return mx, idx


def _detection_core(threshold, logits, bbox, scale):
    """Softmax over classes, max/argmax with no-object dropped, cxcywh->xyxy*scale.
    Returns packed (B, Q, 8) f32: [score, label, hmask, omask, x0, y0, x1, y1]."""
    prob = _softmax_last(logits)
    pr = prob[..., : logits.shape[-1] - 1]                 # drop no-object class
    s, l = _max_argmax_last(pr)                            # (B,Q,1), (B,Q,1)
    hmask = jnp.logical_and(l == 1, s > threshold).astype(jnp.float32)
    omask = (s > threshold).astype(jnp.float32)

    cx = bbox[..., 0:1]
    cy = bbox[..., 1:2]
    w = bbox[..., 2:3]
    h = bbox[..., 3:4]
    xyxy = jnp.concatenate(
        [cx - 0.5 * w, cy - 0.5 * h, cx + 0.5 * w, cy + 0.5 * h], axis=-1)
    boxes = xyxy * scale                                   # (B,Q,4) * (B,1,4)

    return jnp.concatenate([s, l.astype(jnp.float32), hmask, omask, boxes], axis=-1)


# ----------------------------------------------------------------------------
# kernels
# ----------------------------------------------------------------------------
def _detect_only_kernel(threshold, logits_ref, bbox_ref, scale_ref, det_ref):
    det_ref[...] = _detection_core(threshold, logits_ref[...], bbox_ref[...],
                                   scale_ref[...])


def _fused_kernel(threshold, nho_pad,
                  logits_ref, bbox_ref, scale_ref, act_ref, hidx_ref, oidx_ref,
                  det_ref, score_ref):
    # ---- detection head ----
    det_ref[...] = _detection_core(threshold, logits_ref[...], bbox_ref[...],
                                   scale_ref[...])

    # ---- HOI head ----
    acts = act_ref[...]                                    # (B, P, A+1)
    B, P, A1 = acts.shape
    A = A1 - 1
    K = hidx_ref.shape[-1]

    pa = jax.nn.sigmoid(acts)
    ms = 1.0 - pa[..., A:A1]                               # (B,P,1) matching score > 0
    contrib = ms * pa[..., :A]                             # (B,P,A)

    h_prob = _softmax_last(hidx_ref[...])                  # (B,P,K)
    o_prob = _softmax_last(oidx_ref[...])
    _, h_ind = _max_argmax_last(h_prob)                    # (B,P,1)
    _, o_ind = _max_argmax_last(o_prob)

    # one-hot over flattened (h, o) cells; cells >= K*(K+1) (lane padding) never hit
    ho_ind = h_ind * (K + 1) + o_ind                       # (B,P,1)
    iota_ho = lax.broadcasted_iota(jnp.int32, (1, 1, nho_pad), 2)
    M = (ho_ind == iota_ho).astype(jnp.float32)            # (B,P,nho_pad)

    # best pair per cell: highest matching score, first pair wins ties
    # (reproduces the serial `if matching_score > id_score[h, o]` update, since
    #  ms > 0 always and id_score starts at 0).
    masked_ms = jnp.where(M > 0.5, ms, -1.0)               # (B,P,N)
    col_max = jnp.max(masked_ms, axis=1, keepdims=True)    # (B,1,N)
    iota_p = lax.broadcasted_iota(jnp.int32, masked_ms.shape, 1)
    winner = jnp.min(jnp.where(masked_ms >= col_max, iota_p, P),
                     axis=1, keepdims=True)                # (B,1,N)
    best = jnp.where(jnp.logical_and(iota_p == winner, M > 0.5), 1.0, 0.0)

    # score[b,a,n] = sum_p contrib[b,p,a] * (M + best)[b,p,n]   (MXU batched matmul)
    contrib_t = jnp.swapaxes(contrib, 1, 2)                # (B,A,P)
    score_ref[...] = jnp.einsum('bap,bpn->ban', contrib_t, M + best,
                                preferred_element_type=jnp.float32)


# ----------------------------------------------------------------------------
# pallas_call wrappers (single grid step, whole-batch blocks)
# ----------------------------------------------------------------------------
def _full_spec(shape):
    return pl.BlockSpec(shape, lambda *_: (0,) * len(shape))


@functools.partial(jax.jit, static_argnames=("threshold",))
def _fused_device(logits, bbox, target_sizes, acts, hidx, oidx, *, threshold):
    B, Q, C = logits.shape
    P, A1 = acts.shape[1], acts.shape[2]
    K = hidx.shape[2]
    A = A1 - 1
    nho = K * (K + 1)
    nho_pad = -(-nho // 128) * 128                         # lane-dense output

    img_h = target_sizes[:, 0].astype(jnp.float32)
    img_w = target_sizes[:, 1].astype(jnp.float32)
    scale = jnp.stack([img_w, img_h, img_w, img_h], axis=1).reshape(B, 1, 4)

    kern = functools.partial(_fused_kernel, float(threshold), nho_pad)
    grid_spec = pltpu.PrefetchScalarGridSpec(
        num_scalar_prefetch=0,
        grid=(1,),
        in_specs=[
            _full_spec((B, Q, C)),
            _full_spec((B, Q, 4)),
            _full_spec((B, 1, 4)),
            _full_spec((B, P, A1)),
            _full_spec((B, P, K)),
            _full_spec((B, P, K)),
        ],
        out_specs=[
            _full_spec((B, Q, 8)),
            _full_spec((B, A, nho_pad)),
        ],
    )
    out_shape = (
        jax.ShapeDtypeStruct((B, Q, 8), jnp.float32),      # packed detection slab
        jax.ShapeDtypeStruct((B, A, nho_pad), jnp.float32),  # pair score (flat, padded)
    )
    return pl.pallas_call(
        kern,
        out_shape=out_shape,
        grid_spec=grid_spec,
        compiler_params=pltpu.CompilerParams(dimension_semantics=("arbitrary",)),
    )(logits.astype(jnp.float32), bbox.astype(jnp.float32), scale,
      acts.astype(jnp.float32), hidx.astype(jnp.float32), oidx.astype(jnp.float32))


@functools.partial(jax.jit, static_argnames=("threshold",))
def _detect_device(logits, bbox, target_sizes, *, threshold):
    B, Q, C = logits.shape
    img_h = target_sizes[:, 0].astype(jnp.float32)
    img_w = target_sizes[:, 1].astype(jnp.float32)
    scale = jnp.stack([img_w, img_h, img_w, img_h], axis=1).reshape(B, 1, 4)

    kern = functools.partial(_detect_only_kernel, float(threshold))
    grid_spec = pltpu.PrefetchScalarGridSpec(
        num_scalar_prefetch=0,
        grid=(1,),
        in_specs=[_full_spec((B, Q, C)), _full_spec((B, Q, 4)), _full_spec((B, 1, 4))],
        out_specs=_full_spec((B, Q, 8)),
    )
    return pl.pallas_call(
        kern,
        out_shape=jax.ShapeDtypeStruct((B, Q, 8), jnp.float32),
        grid_spec=grid_spec,
        compiler_params=pltpu.CompilerParams(dimension_semantics=("arbitrary",)),
    )(logits.astype(jnp.float32), bbox.astype(jnp.float32), scale)


# ----------------------------------------------------------------------------
# Python wrapper reproducing PostProcess.forward
# ----------------------------------------------------------------------------
def post_process(outputs, target_sizes, threshold=0.0, hoi_det=True, is_vcoco=False):
    out_logits = outputs['pred_logits']
    out_bbox = outputs['pred_boxes']
    assert out_logits.shape[0] == target_sizes.shape[0]
    assert target_sizes.shape[1] == 2
    B, Q, _ = out_logits.shape
    target_sizes = jnp.asarray(target_sizes)

    if not hoi_det:
        det = jax.block_until_ready(
            _detect_device(out_logits, out_bbox, target_sizes,
                           threshold=float(threshold)))
        det_np = np.asarray(det)
        return [{'scores': det_np[b, :, 0],
                 'labels': det_np[b, :, 1].astype(np.int64),
                 'boxes': det_np[b, :, 4:8]} for b in range(B)]

    out_time = outputs['hoi_recognition_time']
    start_time = time.time()
    det, score_flat = _fused_device(out_logits, out_bbox, target_sizes,
                                    outputs['pred_actions'],
                                    outputs['pred_hidx'],
                                    outputs['pred_oidx'],
                                    threshold=float(threshold))
    det, score_flat = jax.block_until_ready((det, score_flat))
    hoi_recognition_time = time.time() - start_time + out_time

    # single batched D2H transfer per output slab
    det_np = np.asarray(det)                     # (B, Q, 8)
    score_np = np.asarray(score_flat)            # (B, A, NHO_pad)

    scores = det_np[..., 0]
    labels = det_np[..., 1].astype(np.int64)
    h_mask = det_np[..., 2].astype(bool)
    o_mask = det_np[..., 3].astype(bool)
    boxes = det_np[..., 4:8]

    A = outputs['pred_actions'].shape[-1] - 1
    K = Q
    pair_score_full = score_np[:, :, :K * (K + 1)].reshape(B, A, K, K + 1)

    results = []
    for b in range(B):
        s, l, bx = scores[b], labels[b], boxes[b]
        h_inds, o_inds = h_mask[b], o_mask[b]
        result_dict = {
            'h_box': bx[h_inds], 'h_cat': s[h_inds],
            'o_box': bx[o_inds], 'o_cat': s[o_inds],
            'scores': s, 'labels': l, 'boxes': bx,
        }
        # TODO(synk): is_vcoco branch (dummy box append + h_idx==o_idx -> -1 remap) not implemented.
        sc = pair_score_full[b][:, h_inds, :]
        # The extra (K+1)-th object column is only reachable on the vcoco path,
        # so it is never selected here.
        sc = sc[:, :, np.concatenate([o_inds, np.array([False])])]
        result_dict.update({'pair_score': sc,
                            'hoi_recognition_time': hoi_recognition_time})
        results.append(result_dict)
    return results


if __name__ == "__main__":
    key = jax.random.PRNGKey(0)
    B, Q, C = 2, 8, 16       # batch, detection queries (= K boxes), classes incl. no-object
    P, A1 = 8, 9             # HOI pair queries, actions incl. no-interaction

    k1, k2, k3, k4, k5 = jax.random.split(key, 5)
    outputs = {
        'pred_logits':  jax.random.normal(k1, (B, Q, C), jnp.float32),
        'pred_boxes':   jax.random.uniform(k2, (B, Q, 4), jnp.float32, 0.1, 0.9),
        'pred_actions': jax.random.normal(k3, (B, P, A1), jnp.float32),
        'pred_hidx':    jax.random.normal(k4, (B, P, Q), jnp.float32),
        'pred_oidx':    jax.random.normal(k5, (B, P, Q), jnp.float32),
        'hoi_recognition_time': 0.0,
    }
    target_sizes = jnp.array([[480.0, 640.0], [320.0, 512.0]], jnp.float32)

    results = post_process(outputs, target_sizes, threshold=0.0, hoi_det=True)

    # Light sanity checks on shapes.
    assert results[0]['boxes'].shape == (Q, 4)
    assert results[0]['scores'].shape == (Q,)
    assert results[0]['labels'].shape == (Q,)
    assert results[0]['pair_score'].ndim == 3

    # Also exercise the detection-only path.
    det_results = post_process(outputs, target_sizes, threshold=0.0, hoi_det=False)
    assert det_results[0]['boxes'].shape == (Q, 4)

    print("KERNEL_OK")
</pallas_src>

<mosaic_0001>
module attributes {stable_mosaic.version = 11 : i64} {
  func.func @_fused_kernel(%arg0: i32, %arg1: memref<2x8x16xf32, #tpu.memory_space<vmem>>, %arg2: memref<2x8x4xf32, #tpu.memory_space<vmem>>, %arg3: memref<2x1x4xf32, #tpu.memory_space<vmem>>, %arg4: memref<2x8x9xf32, #tpu.memory_space<vmem>>, %arg5: memref<2x8x8xf32, #tpu.memory_space<vmem>>, %arg6: memref<2x8x8xf32, #tpu.memory_space<vmem>>, %arg7: memref<2x8x8xf32, #tpu.memory_space<vmem>>, %arg8: memref<2x8x128xf32, #tpu.memory_space<vmem>>) attributes {dimension_semantics = [#tpu.dimension_semantics<arbitrary>], iteration_bounds = array<i64: 1>, scalar_prefetch = 0 : i64, scratch_operands = 0 : i64, tpu.core_type = #tpu.core_type<tc>, window_params = [{pipeline_mode = #tpu.pipeline_mode<synchronous>, transform_indices = @transform_0, window_bounds = array<i64: 2, 8, 16>}, {pipeline_mode = #tpu.pipeline_mode<synchronous>, transform_indices = @transform_1, window_bounds = array<i64: 2, 8, 4>}, {pipeline_mode = #tpu.pipeline_mode<synchronous>, transform_indices = @transform_2, window_bounds = array<i64: 2, 1, 4>}, {pipeline_mode = #tpu.pipeline_mode<synchronous>, transform_indices = @transform_3, window_bounds = array<i64: 2, 8, 9>}, {pipeline_mode = #tpu.pipeline_mode<synchronous>, transform_indices = @transform_4, window_bounds = array<i64: 2, 8, 8>}, {pipeline_mode = #tpu.pipeline_mode<synchronous>, transform_indices = @transform_5, window_bounds = array<i64: 2, 8, 8>}, {pipeline_mode = #tpu.pipeline_mode<synchronous>, transform_indices = @transform_6, window_bounds = array<i64: 2, 8, 8>}, {pipeline_mode = #tpu.pipeline_mode<synchronous>, transform_indices = @transform_7, window_bounds = array<i64: 2, 8, 128>}]} {
    %c0 = arith.constant 0 : index
    %c0_0 = arith.constant 0 : index
    %c0_1 = arith.constant 0 : index
    %0 = vector.load %arg1[%c0, %c0_0, %c0_1] : memref<2x8x16xf32, #tpu.memory_space<vmem>>, vector<2x8x16xf32>
    %c0_2 = arith.constant 0 : index
    %c0_3 = arith.constant 0 : index
    %c0_4 = arith.constant 0 : index
    %1 = vector.load %arg2[%c0_2, %c0_3, %c0_4] : memref<2x8x4xf32, #tpu.memory_space<vmem>>, vector<2x8x4xf32>
    %c0_5 = arith.constant 0 : index
    %c0_6 = arith.constant 0 : index
    %c0_7 = arith.constant 0 : index
    %2 = vector.load %arg3[%c0_5, %c0_6, %c0_7] : memref<2x1x4xf32, #tpu.memory_space<vmem>>, vector<2x1x4xf32>
    %cst = arith.constant dense<0xFF800000> : vector<2x8xf32>
    %3 = vector.multi_reduction <maximumf>, %0, %cst [2] : vector<2x8x16xf32> to vector<2x8xf32>
    %4 = vector.shape_cast %3 : vector<2x8xf32> to vector<2x8x1xf32>
    %5 = vector.broadcast %4 : vector<2x8x1xf32> to vector<2x8x16xf32>
    %6 = arith.subf %0, %5 : vector<2x8x16xf32>
    %7 = math.exp %6 : vector<2x8x16xf32>
    %cst_8 = arith.constant dense<0.000000e+00> : vector<2x8xf32>
    %8 = vector.multi_reduction <add>, %7, %cst_8 [2] : vector<2x8x16xf32> to vector<2x8xf32>
    %9 = vector.shape_cast %8 : vector<2x8xf32> to vector<2x8x1xf32>
    %10 = vector.broadcast %9 : vector<2x8x1xf32> to vector<2x8x16xf32>
    %11 = arith.divf %7, %10 : vector<2x8x16xf32>
    %12 = vector.extract_strided_slice %11 {offsets = [0, 0, 0], sizes = [2, 8, 15], strides = [1, 1, 1]} : vector<2x8x16xf32> to vector<2x8x15xf32>
    %cst_9 = arith.constant dense<0xFF800000> : vector<2x8xf32>
    %13 = vector.multi_reduction <maximumf>, %12, %cst_9 [2] : vector<2x8x15xf32> to vector<2x8xf32>
    %14 = vector.shape_cast %13 : vector<2x8xf32> to vector<2x8x1xf32>
    %15 = tpu.iota {dimensions = array<i32: 2>} : vector<2x8x15xi32>
    %16 = vector.broadcast %14 : vector<2x8x1xf32> to vector<2x8x15xf32>
    %17 = arith.cmpf oge, %12, %16 : vector<2x8x15xf32>
    %c15_i32 = arith.constant 15 : i32
    %18 = vector.broadcast %c15_i32 : i32 to vector<2x8x15xi32>
    %19 = arith.select %17, %15, %18 : vector<2x8x15xi1>, vector<2x8x15xi32>
    %cst_10 = arith.constant dense<2147483647> : vector<2x8xi32>
    %20 = vector.multi_reduction <minsi>, %19, %cst_10 [2] : vector<2x8x15xi32> to vector<2x8xi32>
    %21 = vector.shape_cast %20 : vector<2x8xi32> to vector<2x8x1xi32>
    %c1_i32 = arith.constant 1 : i32
    %22 = vector.broadcast %c1_i32 : i32 to vector<2x8x1xi32>
    %23 = arith.cmpi eq, %21, %22 : vector<2x8x1xi32>
    %cst_11 = arith.constant 0.000000e+00 : f32
    %24 = vector.broadcast %cst_11 : f32 to vector<2x8x1xf32>
    %25 = arith.cmpf ogt, %14, %24 : vector<2x8x1xf32>
    %26 = arith.andi %23, %25 : vector<2x8x1xi1>
    %27 = arith.extui %26 : vector<2x8x1xi1> to vector<2x8x1xi32>
    %28 = arith.sitofp %27 : vector<2x8x1xi32> to vector<2x8x1xf32>
    %cst_12 = arith.constant 0.000000e+00 : f32
    %29 = vector.broadcast %cst_12 : f32 to vector<2x8x1xf32>
    %30 = arith.cmpf ogt, %14, %29 : vector<2x8x1xf32>
    %31 = arith.extui %30 : vector<2x8x1xi1> to vector<2x8x1xi32>
    %32 = arith.sitofp %31 : vector<2x8x1xi32> to vector<2x8x1xf32>
    %33 = vector.extract_strided_slice %1 {offsets = [0, 0, 0], sizes = [2, 8, 1], strides = [1, 1, 1]} : vector<2x8x4xf32> to vector<2x8x1xf32>
    %34 = vector.extract_strided_slice %1 {offsets = [0, 0, 1], sizes = [2, 8, 1], strides = [1, 1, 1]} : vector<2x8x4xf32> to vector<2x8x1xf32>
    %35 = vector.extract_strided_slice %1 {offsets = [0, 0, 2], sizes = [2, 8, 1], strides = [1, 1, 1]} : vector<2x8x4xf32> to vector<2x8x1xf32>
    %36 = vector.extract_strided_slice %1 {offsets = [0, 0, 3], sizes = [2, 8, 1], strides = [1, 1, 1]} : vector<2x8x4xf32> to vector<2x8x1xf32>
    %cst_13 = arith.constant 5.000000e-01 : f32
    %37 = vector.broadcast %cst_13 : f32 to vector<2x8x1xf32>
    %38 = arith.mulf %37, %35 : vector<2x8x1xf32>
    %39 = arith.subf %33, %38 : vector<2x8x1xf32>
    %cst_14 = arith.constant 5.000000e-01 : f32
    %40 = vector.broadcast %cst_14 : f32 to vector<2x8x1xf32>
    %41 = arith.mulf %40, %36 : vector<2x8x1xf32>
    %42 = arith.subf %34, %41 : vector<2x8x1xf32>
    %cst_15 = arith.constant 5.000000e-01 : f32
    %43 = vector.broadcast %cst_15 : f32 to vector<2x8x1xf32>
    %44 = arith.mulf %43, %35 : vector<2x8x1xf32>
    %45 = arith.addf %33, %44 : vector<2x8x1xf32>
    %cst_16 = arith.constant 5.000000e-01 : f32
    %46 = vector.broadcast %cst_16 : f32 to vector<2x8x1xf32>
    %47 = arith.mulf %46, %36 : vector<2x8x1xf32>
    %48 = arith.addf %34, %47 : vector<2x8x1xf32>
    %49 = tpu.concatenate %39, %42, %45, %48 in 2 : vector<2x8x1xf32>, vector<2x8x1xf32>, vector<2x8x1xf32>, vector<2x8x1xf32> -> vector<2x8x4xf32>
    %50 = vector.broadcast %2 : vector<2x1x4xf32> to vector<2x8x4xf32>
    %51 = arith.mulf %49, %50 : vector<2x8x4xf32>
    %52 = arith.sitofp %21 : vector<2x8x1xi32> to vector<2x8x1xf32>
    %53 = tpu.concatenate %14, %52, %28, %32, %51 in 2 : vector<2x8x1xf32>, vector<2x8x1xf32>, vector<2x8x1xf32>, vector<2x8x1xf32>, vector<2x8x4xf32> -> vector<2x8x8xf32>
    %c0_17 = arith.constant 0 : index
    %c0_18 = arith.constant 0 : index
    %c0_19 = arith.constant 0 : index
    %54 = vector.load %arg7[%c0_17, %c0_18, %c0_19] : memref<2x8x8xf32, #tpu.memory_space<vmem>>, vector<2x8x8xf32>
    tpu.vector_store %arg7[%c0_17, %c0_18, %c0_19], %53 {strides = array<i32>} : memref<2x8x8xf32, #tpu.memory_space<vmem>>, vector<2x8x8xf32>,
    %c0_20 = arith.constant 0 : index
    %c0_21 = arith.constant 0 : index
    %c0_22 = arith.constant 0 : index
    %55 = vector.load %arg4[%c0_20, %c0_21, %c0_22] : memref<2x8x9xf32, #tpu.memory_space<vmem>>, vector<2x8x9xf32>
    %56 = arith.negf %55 : vector<2x8x9xf32>
    %57 = math.exp %56 : vector<2x8x9xf32>
    %cst_23 = arith.constant 1.000000e+00 : f32
    %58 = vector.broadcast %cst_23 : f32 to vector<2x8x9xf32>
    %59 = arith.addf %58, %57 : vector<2x8x9xf32>
    %60 = arith.divf %58, %59 : vector<2x8x9xf32>
    %61 = vector.extract_strided_slice %60 {offsets = [0, 0, 8], sizes = [2, 8, 1], strides = [1, 1, 1]} : vector<2x8x9xf32> to vector<2x8x1xf32>
    %cst_24 = arith.constant 1.000000e+00 : f32
    %62 = vector.broadcast %cst_24 : f32 to vector<2x8x1xf32>
    %63 = arith.subf %62, %61 : vector<2x8x1xf32>
    %64 = vector.extract_strided_slice %60 {offsets = [0, 0, 0], sizes = [2, 8, 8], strides = [1, 1, 1]} : vector<2x8x9xf32> to vector<2x8x8xf32>
    %65 = vector.broadcast %63 : vector<2x8x1xf32> to vector<2x8x8xf32>
    %66 = arith.mulf %65, %64 : vector<2x8x8xf32>
    %c0_25 = arith.constant 0 : index
    %c0_26 = arith.constant 0 : index
    %c0_27 = arith.constant 0 : index
    %67 = vector.load %arg5[%c0_25, %c0_26, %c0_27] : memref<2x8x8xf32, #tpu.memory_space<vmem>>, vector<2x8x8xf32>
    %cst_28 = arith.constant dense<0xFF800000> : vector<2x8xf32>
    %68 = vector.multi_reduction <maximumf>, %67, %cst_28 [2] : vector<2x8x8xf32> to vector<2x8xf32>
    %69 = vector.shape_cast %68 : vector<2x8xf32> to vector<2x8x1xf32>
    %70 = vector.broadcast %69 : vector<2x8x1xf32> to vector<2x8x8xf32>
    %71 = arith.subf %67, %70 : vector<2x8x8xf32>
    %72 = math.exp %71 : vector<2x8x8xf32>
    %cst_29 = arith.constant dense<0.000000e+00> : vector<2x8xf32>
    %73 = vector.multi_reduction <add>, %72, %cst_29 [2] : vector<2x8x8xf32> to vector<2x8xf32>
    %74 = vector.shape_cast %73 : vector<2x8xf32> to vector<2x8x1xf32>
    %75 = vector.broadcast %74 : vector<2x8x1xf32> to vector<2x8x8xf32>
    %76 = arith.divf %72, %75 : vector<2x8x8xf32>
    %c0_30 = arith.constant 0 : index
    %c0_31 = arith.constant 0 : index
    %c0_32 = arith.constant 0 : index
    %77 = vector.load %arg6[%c0_30, %c0_31, %c0_32] : memref<2x8x8xf32, #tpu.memory_space<vmem>>, vector<2x8x8xf32>
    %cst_33 = arith.constant dense<0xFF800000> : vector<2x8xf32>
    %78 = vector.multi_reduction <maximumf>, %77, %cst_33 [2] : vector<2x8x8xf32> to vector<2x8xf32>
    %79 = vector.shape_cast %78 : vector<2x8xf32> to vector<2x8x1xf32>
    %80 = vector.broadcast %79 : vector<2x8x1xf32> to vector<2x8x8xf32>
    %81 = arith.subf %77, %80 : vector<2x8x8xf32>
    %82 = math.exp %81 : vector<2x8x8xf32>
    %cst_34 = arith.constant dense<0.000000e+00> : vector<2x8xf32>
    %83 = vector.multi_reduction <add>, %82, %cst_34 [2] : vector<2x8x8xf32> to vector<2x8xf32>
    %84 = vector.shape_cast %83 : vector<2x8xf32> to vector<2x8x1xf32>
    %85 = vector.broadcast %84 : vector<2x8x1xf32> to vector<2x8x8xf32>
    %86 = arith.divf %82, %85 : vector<2x8x8xf32>
    %cst_35 = arith.constant dense<0xFF800000> : vector<2x8xf32>
    %87 = vector.multi_reduction <maximumf>, %76, %cst_35 [2] : vector<2x8x8xf32> to vector<2x8xf32>
    %88 = vector.shape_cast %87 : vector<2x8xf32> to vector<2x8x1xf32>
    %89 = tpu.iota {dimensions = array<i32: 2>} : vector<2x8x8xi32>
    %90 = vector.broadcast %88 : vector<2x8x1xf32> to vector<2x8x8xf32>
    %91 = arith.cmpf oge, %76, %90 : vector<2x8x8xf32>
    %c8_i32 = arith.constant 8 : i32
    %92 = vector.broadcast %c8_i32 : i32 to vector<2x8x8xi32>
    %93 = arith.select %91, %89, %92 : vector<2x8x8xi1>, vector<2x8x8xi32>
    %cst_36 = arith.constant dense<2147483647> : vector<2x8xi32>
    %94 = vector.multi_reduction <minsi>, %93, %cst_36 [2] : vector<2x8x8xi32> to vector<2x8xi32>
    %95 = vector.shape_cast %94 : vector<2x8xi32> to vector<2x8x1xi32>
    %cst_37 = arith.constant dense<0xFF800000> : vector<2x8xf32>
    %96 = vector.multi_reduction <maximumf>, %86, %cst_37 [2] : vector<2x8x8xf32> to vector<2x8xf32>
    %97 = vector.shape_cast %96 : vector<2x8xf32> to vector<2x8x1xf32>
    %98 = tpu.iota {dimensions = array<i32: 2>} : vector<2x8x8xi32>
    %99 = vector.broadcast %97 : vector<2x8x1xf32> to vector<2x8x8xf32>
    %100 = arith.cmpf oge, %86, %99 : vector<2x8x8xf32>
    %c8_i32_38 = arith.constant 8 : i32
    %101 = vector.broadcast %c8_i32_38 : i32 to vector<2x8x8xi32>
    %102 = arith.select %100, %98, %101 : vector<2x8x8xi1>, vector<2x8x8xi32>
    %cst_39 = arith.constant dense<2147483647> : vector<2x8xi32>
    %103 = vector.multi_reduction <minsi>, %102, %cst_39 [2] : vector<2x8x8xi32> to vector<2x8xi32>
    %104 = vector.shape_cast %103 : vector<2x8xi32> to vector<2x8x1xi32>
    %c9_i32 = arith.constant 9 : i32
    %105 = vector.broadcast %c9_i32 : i32 to vector<2x8x1xi32>
    %106 = arith.muli %95, %105 : vector<2x8x1xi32>
    %107 = arith.addi %106, %104 : vector<2x8x1xi32>
    %108 = tpu.iota {dimensions = array<i32: 2>} : vector<1x1x128xi32>
    %109 = vector.broadcast %107 : vector<2x8x1xi32> to vector<2x8x128xi32>
    %110 = vector.broadcast %108 : vector<1x1x128xi32> to vector<2x8x128xi32>
    %111 = arith.cmpi eq, %109, %110 : vector<2x8x128xi32>
    %112 = arith.extui %111 : vector<2x8x128xi1> to vector<2x8x128xi32>
    %113 = arith.sitofp %112 : vector<2x8x128xi32> to vector<2x8x128xf32>
    %cst_40 = arith.constant 5.000000e-01 : f32
    %114 = vector.broadcast %cst_40 : f32 to vector<2x8x128xf32>
    %115 = arith.cmpf ogt, %113, %114 : vector<2x8x128xf32>
    %cst_41 = arith.constant -1.000000e+00 : f32
    %116 = vector.shape_cast %63 : vector<2x8x1xf32> to vector<2x8x1xf32>
    %117 = vector.broadcast %116 : vector<2x8x1xf32> to vector<2x8x128xf32>
    %118 = vector.broadcast %cst_41 : f32 to vector<2x8x128xf32>
    %119 = arith.select %115, %117, %118 : vector<2x8x128xi1>, vector<2x8x128xf32>
    %cst_42 = arith.constant dense<0xFF800000> : vector<2x128xf32>
    %120 = vector.multi_reduction <maximumf>, %119, %cst_42 [1] : vector<2x8x128xf32> to vector<2x128xf32>
    %121 = vector.shape_cast %120 : vector<2x128xf32> to vector<2x1x128xf32>
    %122 = tpu.iota {dimensions = array<i32: 1>} : vector<2x8x128xi32>
    %123 = vector.broadcast %121 : vector<2x1x128xf32> to vector<2x8x128xf32>
    %124 = arith.cmpf oge, %119, %123 : vector<2x8x128xf32>
    %c8_i32_43 = arith.constant 8 : i32
    %125 = vector.broadcast %c8_i32_43 : i32 to vector<2x8x128xi32>
    %126 = arith.select %124, %122, %125 : vector<2x8x128xi1>, vector<2x8x128xi32>
    %cst_44 = arith.constant dense<2147483647> : vector<2x128xi32>
    %127 = vector.multi_reduction <minsi>, %126, %cst_44 [1] : vector<2x8x128xi32> to vector<2x128xi32>
    %128 = vector.shape_cast %127 : vector<2x128xi32> to vector<2x1x128xi32>
    %129 = vector.broadcast %128 : vector<2x1x128xi32> to vector<2x8x128xi32>
    %130 = arith.cmpi eq, %122, %129 : vector<2x8x128xi32>
    %cst_45 = arith.constant 5.000000e-01 : f32
    %131 = vector.broadcast %cst_45 : f32 to vector<2x8x128xf32>
    %132 = arith.cmpf ogt, %113, %131 : vector<2x8x128xf32>
    %133 = arith.andi %130, %132 : vector<2x8x128xi1>
    %cst_46 = arith.constant 1.000000e+00 : f32
    %cst_47 = arith.constant 0.000000e+00 : f32
    %134 = vector.broadcast %cst_46 : f32 to vector<2x8x128xf32>
    %135 = vector.broadcast %cst_47 : f32 to vector<2x8x128xf32>
    %136 = arith.select %133, %134, %135 : vector<2x8x128xi1>, vector<2x8x128xf32>
    %137 = tpu.transpose %66, [0, 2, 1] : vector<2x8x8xf32> -> vector<2x8x8xf32>
    %138 = arith.addf %113, %136 : vector<2x8x128xf32>
    "tpu.trace_start"() <{level = 10 : i32, message = "bap,bpn->ban"}> : () -> ()
    %cst_48 = arith.constant dense<0.000000e+00> : vector<2x8x128xf32>
    %139 = tpu.matmul %137, %138, %cst_48 {dimension_numbers = #tpu.dot_dimension_numbers<[2], [1], [1], [2], [0, 0, 0, 1, 1, 2], [0], [0]>} : vector<2x8x8xf32>, vector<2x8x128xf32>, vector<2x8x128xf32> -> vector<2x8x128xf32>
    "tpu.trace_stop"() : () -> ()
    %c0_49 = arith.constant 0 : index
    %c0_50 = arith.constant 0 : index
    %c0_51 = arith.constant 0 : index
    %140 = vector.load %arg8[%c0_49, %c0_50, %c0_51] : memref<2x8x128xf32, #tpu.memory_space<vmem>>, vector<2x8x128xf32>
    tpu.vector_store %arg8[%c0_49, %c0_50, %c0_51], %139 {strides = array<i32>} : memref<2x8x128xf32, #tpu.memory_space<vmem>>, vector<2x8x128xf32>,
    return
  }
  func.func @transform_0(%arg0: i32) -> (i32, i32, i32) {
    %c0_i32 = arith.constant 0 : i32
    %c0_i32_0 = arith.constant 0 : i32
    %c0_i32_1 = arith.constant 0 : i32
    %c0_i32_2 = arith.constant 0 : i32
    return %c0_i32, %c0_i32_0, %c0_i32_1 : i32, i32, i32
  }
  func.func @transform_1(%arg0: i32) -> (i32, i32, i32) {
    %c0_i32 = arith.constant 0 : i32
    %c0_i32_0 = arith.constant 0 : i32
    %c0_i32_1 = arith.constant 0 : i32
    %c0_i32_2 = arith.constant 0 : i32
    return %c0_i32, %c0_i32_0, %c0_i32_1 : i32, i32, i32
  }
  func.func @transform_2(%arg0: i32) -> (i32, i32, i32) {
    %c0_i32 = arith.constant 0 : i32
    %c0_i32_0 = arith.constant 0 : i32
    %c0_i32_1 = arith.constant 0 : i32
    %c0_i32_2 = arith.constant 0 : i32
    return %c0_i32, %c0_i32_0, %c0_i32_1 : i32, i32, i32
  }
  func.func @transform_3(%arg0: i32) -> (i32, i32, i32) {
    %c0_i32 = arith.constant 0 : i32
    %c0_i32_0 = arith.constant 0 : i32
    %c0_i32_1 = arith.constant 0 : i32
    %c0_i32_2 = arith.constant 0 : i32
    return %c0_i32, %c0_i32_0, %c0_i32_1 : i32, i32, i32
  }
  func.func @transform_4(%arg0: i32) -> (i32, i32, i32) {
    %c0_i32 = arith.constant 0 : i32
    %c0_i32_0 = arith.constant 0 : i32
    %c0_i32_1 = arith.constant 0 : i32
    %c0_i32_2 = arith.constant 0 : i32
    return %c0_i32, %c0_i32_0, %c0_i32_1 : i32, i32, i32
  }
  func.func @transform_5(%arg0: i32) -> (i32, i32, i32) {
    %c0_i32 = arith.constant 0 : i32
    %c0_i32_0 = arith.constant 0 : i32
    %c0_i32_1 = arith.constant 0 : i32
    %c0_i32_2 = arith.constant 0 : i32
    return %c0_i32, %c0_i32_0, %c0_i32_1 : i32, i32, i32
  }
  func.func @transform_6(%arg0: i32) -> (i32, i32, i32) {
    %c0_i32 = arith.constant 0 : i32
    %c0_i32_0 = arith.constant 0 : i32
    %c0_i32_1 = arith.constant 0 : i32
    %c0_i32_2 = arith.constant 0 : i32
    return %c0_i32, %c0_i32_0, %c0_i32_1 : i32, i32, i32
  }
  func.func @transform_7(%arg0: i32) -> (i32, i32, i32) {
    %c0_i32 = arith.constant 0 : i32
    %c0_i32_0 = arith.constant 0 : i32
    %c0_i32_1 = arith.constant 0 : i32
    %c0_i32_2 = arith.constant 0 : i32
    return %c0_i32, %c0_i32_0, %c0_i32_1 : i32, i32, i32
  }
}

</mosaic_0001>

<bundles_post_ra>
// kernel: _fused_device.1
= control target key start
LH: loop header
LB: loop body
LE: loop exit
PB: predicated region body
PF: predicated region fallthrough
CT: control target
= control target key end

     0   :  { %13 = vsyncpa [#allocation3], 0  ;;  %s1021_s0 = inlined_call_operand.vmem [shape: f32[2,8,16], index: 0, kind: input, shape index: {}]   ;;  %s1022_s1 = inlined_call_operand.vmem [shape: f32[2,8,4], index: 1, kind: input, shape index: {}]   ;;  %s1023_s2 = inlined_call_operand.vmem [shape: f32[2,1,4], index: 2, kind: input, shape index: {}]   ;;  %s1024_s3 = inlined_call_operand.vmem [shape: f32[2,8,9], index: 3, kind: input, shape index: {}]   ;;  %s1025_s4 = inlined_call_operand.vmem [shape: f32[2,8,8], index: 4, kind: input, shape index: {}]   ;;  %s1026_s5 = inlined_call_operand.hbm [shape: f32[2,8,8], index: 5, kind: input, shape index: {}]   ;;  %s1027_s6 = inlined_call_operand.hbm [shape: f32[2,8,8], index: 6, kind: output, shape index: {0}]   ;;  %s1028_s7 = inlined_call_operand.hbm [shape: f32[2,8,128], index: 7, kind: output, shape index: {1}]  }
   0x1   :  { %14 = vsyncpa [#allocation4], 0 }
   0x2   :  { %15 = vsyncpa [#allocation7], 0  ;;  %s794_s24 = smov [#allocation2]   ;;  %s722_s28 = scalar_lea.hbm %s1026_s5, 256 }
   0x3   :  { %s31_s25 = sshll.u32 %s794_s24, 4  ;;  %p723_p0 = scmp.ne.s32.totalorder %s1026_s5, %s722_s28  ;;  %s32_s25 = int_to_ptr.vmem [resolvable:$true] %s31_s25 }
   0x4   :  { %p726_p1 = scmp.lt.u32.totalorder %s722_s28, %s1026_s5 }
   0x6   :  { %p728_p2 = pnand %p726_p1, %p723_p0 }
   0x8   :  { %731 = shalt.err (!%p728_p2)
}
   0x9   :  { %s732_s10 = scalar_lea.vmem %s32_s25, 256  ;;  %p737_p4 = scmp.lt.s32.totalorder %s32_s25, %s32_s25 }
   0xa   :  { %p733_p3 = scmp.ne.s32.totalorder %s32_s25, %s732_s10  ;;  %p738_p5 = scmp.lt.s32.totalorder %s732_s10, %s732_s10 }
   0xc   :  { %p739_p6 = por %p738_p5, %p737_p4 }
   0xe   :  { %p740_p7 = pnand %p739_p6, %p733_p3 }
  0x10   :  { %743 = shalt.err (!%p740_p7)
}
  0x11   :  { %s795_s11 = smov 128   ;;  %s796_s12 = smov 8  }
  0x12   :  { %37 = dma.hbm_to_vmem [thread:$0]  %s1026_s5, 256, %s32_s25, [#allocation3], %s795_s11, %s795_s11, %s796_s12  }
  0x13   :  { %788 = dma.done.wait [#allocation3], 256  }
  0x14   :  { %789 = vsyncadd [#allocation3], 4294967040  ;;  %vm189_vm0 = vcmask 64512   ;;  %v220_v0 = vld [vmem:[%s1025_s4] sm:$0xff]  ;;  %v221_v2 = vld [vmem:[%s1025_s4 + $0x8] sm:$0xff]  ;;  %vm47_vm1 = vcmask 130048   ;;  %v77_v48 = vlaneseq }
  0x15   :  { %v244_v1 = vld [vmem:[#allocation2] sm:$0xff]  ;;  %v222_v3 = vsel %vm189_vm0, %v220_v0, -inf  ;;  %v245_v5 = vld [vmem:[#allocation2 + $0x8] sm:$0xff]  ;;  %v225_v6 = vsel %vm189_vm0, %v221_v2, -inf  ;;  %s800_s27 = smov 126   ;;  %s802_s30 = smov 4  }
  0x16   :  { %v246_v4 = vsel %vm189_vm0, %v244_v1, -inf  ;;  %223 = vmax.xlane.f32.xlu0 %v222_v3  ;;  %v249_v7 = vsel %vm189_vm0, %v245_v5, -inf  ;;  %v41_v40 = vld [vmem:[%s1021_s0] sm:$0xff]  ;;  %v42_v44 = vld [vmem:[%s1021_s0 + $0x8] sm:$0xff]  ;;  %v887_v49 = vand.u32 127, %v77_v48  ;;  %s803_s10 = smov [#allocation6]  }
  0x17   :  { %247 = vmax.xlane.f32.xlu1 %v246_v4  ;;  %v48_v45 = vsel %vm47_vm1, %v41_v40, -inf  ;;  %v51_v47 = vsel %vm47_vm1, %v42_v44, -inf  ;;  %s635_s13 = sshll.u32 %s803_s10, 4  ;;  %s636_s13 = int_to_ptr.vmem [resolvable:$true] %s635_s13 }
  0x18   :  { %s744_s14 = scalar_lea.vmem %s636_s13, 256  ;;  %p749_p9 = scmp.lt.s32.totalorder %s636_s13, %s636_s13 }
  0x19   :  { %p745_p8 = scmp.ne.s32.totalorder %s636_s13, %s744_s14  ;;  %p750_p10 = scmp.lt.s32.totalorder %s744_s14, %s744_s14 }
  0x1a   :  { %226 = vmax.xlane.f32.xlu0 %v225_v6 }
  0x1b   :  { %250 = vmax.xlane.f32.xlu1 %v249_v7  ;;  %p751_p11 = por %p750_p10, %p749_p9 }
  0x1d   :  { %p752_p12 = pnand %p751_p11, %p745_p8 }
  0xa3   :  { %v224_v8 = vpop.xlane.xlu0 %223 }
  0xa4   :  { %v248_v9 = vpop.xlane.xlu1 %247  ;;  %v228_v10 = vsub.f32 %v220_v0, %v224_v8 }
  0xa5   :  { %v252_v11 = vsub.f32 %v244_v1, %v248_v9 }
  0xa6   :  { %v230_v12 = vmul.f32 1.442695, %v228_v10 }
  0xa7   :  { %v254_v13 = vmul.f32 1.442695, %v252_v11  ;;  %v227_v14 = vpop.xlane.xlu0 %226 }
  0xa8   :  { %v251_v15 = vpop.xlane.xlu1 %250  ;;  %690 = vpow2.f32 %v230_v12  ;;  %v229_v16 = vsub.f32 %v221_v2, %v227_v14 }
  0xa9   :  { %v253_v17 = vsub.f32 %v245_v5, %v251_v15  ;;  %692 = vpow2.f32 %v254_v13 }
  0xaa   :  { %v232_v18 = vmul.f32 1.442695, %v229_v16  ;;  %v797_v16 = vmov 8  }
  0xab   :  { %v256_v19 = vmul.f32 1.442695, %v253_v17  ;;  %689 = vset.pattern.permute.xlu1 %v797_v16  ;;  %688 = vset.pattern.permute.xlu0 %v797_v16  ;;  %v193_v17 = vld [vmem:[%s1024_s3 + $0x8] sm:$0xff] }
  0xac   :  { %694 = vpow2.f32 %v232_v18  ;;  %v192_v18 = vld [vmem:[%s1024_s3] sm:$0xff] }
  0xad   :  { %696 = vpow2.f32 %v256_v19  ;;  %v658_v19 = vmul.f32 -1.442695, %v193_v17 }
  0xb2   :  { %v691_v20 = vpop.eup %690 }
  0xb3   :  { %v693_v21 = vpop.eup %692  ;;  %v234_v22 = vsel %vm189_vm0, %v691_v20, 0.0 }
  0xb4   :  { %235 = vadd.xlane.f32.xlu0 %v234_v22  ;;  %v258_v23 = vsel %vm189_vm0, %v693_v21, 0.0 }
  0xb6   :  { %v695_v24 = vpop.eup %694 }
  0xb7   :  { %v697_v25 = vpop.eup %696  ;;  %v237_v26 = vsel %vm189_vm0, %v695_v24, 0.0 }
  0xb8   :  { %259 = vadd.xlane.f32.xlu0 %v258_v23  ;;  %238 = vadd.xlane.f32.xlu1 %v237_v26  ;;  %v261_v27 = vsel %vm189_vm0, %v697_v25, 0.0 }
  0xbc   :  { %262 = vadd.xlane.f32.xlu1 %v261_v27 }
 0x141   :  { %v236_v28 = vpop.xlane.xlu0 %235 }
 0x142   :  { %698 = vrcp.f32 %v236_v28 }
 0x145   :  { %v239_v29 = vpop.xlane.xlu1 %238  ;;  %v260_v30 = vpop.xlane.xlu0 %259 }
 0x146   :  { %700 = vrcp.f32 %v239_v29 }
 0x147   :  { %702 = vrcp.f32 %v260_v30 }
 0x149   :  { %v263_v31 = vpop.xlane.xlu1 %262 }
 0x14a   :  { %704 = vrcp.f32 %v263_v31 }
 0x14c   :  { %v699_v32 = vpop.eup %698 }
 0x14d   :  { %v241_v33 = vmul.f32 %v699_v32, %v691_v20  ;;  %v657_v20 = vmul.f32 -1.442695, %v192_v18 }
 0x14f   :  { %v268_v34 = vsel %vm189_vm0, %v241_v33, -inf }
 0x150   :  { %v701_v35 = vpop.eup %700  ;;  %269 = vmax.xlane.f32.xlu0 %v268_v34 }
 0x151   :  { %v703_v36 = vpop.eup %702  ;;  %v243_v37 = vmul.f32 %v701_v35, %v695_v24 }
 0x152   :  { %v265_v38 = vmul.f32 %v703_v36, %v693_v21 }
 0x153   :  { %v271_v39 = vsel %vm189_vm0, %v243_v37, -inf }
 0x154   :  { %v705_v41 = vpop.eup %704  ;;  %272 = vmax.xlane.f32.xlu1 %v271_v39  ;;  %v308_v42 = vsel %vm189_vm0, %v265_v38, -inf }
 0x155   :  { %309 = vmax.xlane.f32.xlu0 %v308_v42  ;;  %v267_v43 = vmul.f32 %v705_v41, %v697_v25 }
 0x157   :  { %v311_v46 = vsel %vm189_vm0, %v267_v43, -inf }
 0x158   :  { %312 = vmax.xlane.f32.xlu1 %v311_v46 }
 0x159   :  { %49 = vmax.xlane.f32.xlu0 %v48_v45  ;;  %v798_v45 = vmov 0.0  }
 0x15a   :  { %667 = vmatprep.subr.mxu0 %v798_v45  ;;  %672 = vmatprep.subr.mxu1 %v798_v45 }
 0x15c   :  { %52 = vmax.xlane.f32.xlu1 %v51_v47 }
 0x1dd   :  { %v270_v50 = vpop.xlane.xlu0 %269 }
 0x1de   :  { %vm274_vm2 = vcmp.ge.f32.partialorder %v241_v33, %v270_v50 }
 0x1df   :  { %v276_v51 = vsel %vm274_vm2, %v887_v49, 8 }
 0x1e0   :  { %v278_v52 = vsel %vm189_vm0, %v276_v51, 2147483647 }
 0x1e1   :  { %v273_v53 = vpop.xlane.xlu1 %272  ;;  %v280_v54 = vshra.s32 %v278_v52, 16  ;;  %v279_v21 = vand.u32 65535, %v278_v52 }
 0x1e2   :  { %vm275_vm3 = vcmp.ge.f32.partialorder %v243_v37, %v273_v53  ;;  %v310_v55 = vpop.xlane.xlu0 %309 }
 0x1e3   :  { %v277_v56 = vsel %vm275_vm3, %v887_v49, 8  ;;  %vm314_vm4 = vcmp.ge.f32.partialorder %v265_v38, %v310_v55  ;;  %v282_v57 = vcvt.s32.f32 %v280_v54  ;;  %v281_v23 = vcvt.s32.f32 %v279_v21 }
 0x1e4   :  { %v293_v58 = vsel %vm189_vm0, %v277_v56, 2147483647  ;;  %v316_v59 = vsel %vm314_vm4, %v887_v49, 8 }
 0x1e5   :  { %v318_v60 = vsel %vm189_vm0, %v316_v59, 2147483647  ;;  %v313_v61 = vpop.xlane.xlu1 %312  ;;  %283 = vmin.xlane.f32.xlu0 %v282_v57  ;;  %v295_v62 = vshra.s32 %v293_v58, 16  ;;  %v294_v24 = vand.u32 65535, %v293_v58 }
 0x1e6   :  { %vm315_vm5 = vcmp.ge.f32.partialorder %v267_v43, %v313_v61  ;;  %v320_v63 = vshra.s32 %v318_v60, 16  ;;  %v50_v0 = vpop.xlane.xlu0 %49  ;;  %v319_v25 = vand.u32 65535, %v318_v60 }
 0x1e7   :  { %v317_v1 = vsel %vm315_vm5, %v887_v49, 8  ;;  %v297_v2 = vcvt.s32.f32 %v295_v62  ;;  %v54_v3 = vsub.f32 %v41_v40, %v50_v0  ;;  %v296_v29 = vcvt.s32.f32 %v294_v24 }
 0x1e8   :  { %v333_v4 = vsel %vm189_vm0, %v317_v1, 2147483647  ;;  %v322_v5 = vcvt.s32.f32 %v320_v63  ;;  %v321_v32 = vcvt.s32.f32 %v319_v25 }
 0x1e9   :  { %298 = vmin.xlane.f32.xlu1 %v297_v2  ;;  %v53_v6 = vpop.xlane.xlu1 %52  ;;  %v56_v7 = vmul.f32 1.442695, %v54_v3  ;;  %v335_v8 = vshra.s32 %v333_v4, 16  ;;  %v334_v30 = vand.u32 65535, %v333_v4 }
 0x1ea   :  { %v55_v9 = vsub.f32 %v42_v44, %v53_v6  ;;  %323 = vmin.xlane.f32.xlu0 %v322_v5 }
 0x1eb   :  { %706 = vpow2.f32 %v56_v7  ;;  %v337_v10 = vcvt.s32.f32 %v335_v8  ;;  %v336_v38 = vcvt.s32.f32 %v334_v30 }
 0x1ec   :  { %v58_v11 = vmul.f32 1.442695, %v55_v9 }
 0x1ed   :  { %338 = vmin.xlane.f32.xlu1 %v337_v10 }
 0x1ee   :  { %708 = vpow2.f32 %v58_v11 }
 0x1ef   :  { %710 = vpow2.f32 %v658_v19 }
 0x1f0   :  { %712 = vpow2.f32 %v657_v20 }
 0x1f5   :  { %v897_v12 = vpop.eup %706 }
 0x1f6   :  { %v60_v13 = vsel %vm47_vm1, %v897_v12, 0.0 }
 0x1f7   :  { %61 = vadd.xlane.f32.xlu0 %v60_v13 }
 0x1f8   :  { %v901_v14 = vpop.eup %708 }
 0x1f9   :  { %v63_v15 = vsel %vm47_vm1, %v901_v14, 0.0  ;;  %v711_v27 = vpop.eup %710 }
 0x1fa   :  { %64 = vadd.xlane.f32.xlu1 %v63_v15  ;;  %v713_v33 = vpop.eup %712  ;;  %v201_v36 = vadd.f32 1.0, %v711_v27 }
 0x1fb   :  { %v200_v39 = vadd.f32 1.0, %v713_v33 }
 0x1fc   :  { %714 = vrcp.f32 %v201_v36 }
 0x1fd   :  { %716 = vrcp.f32 %v200_v39 }
 0x206   :  { %v715_v41 = vpop.eup %714 }
 0x207   :  { %v717_v42 = vpop.eup %716  ;;  %v207_v43 = vsub.f32 1.0, %v715_v41 }
 0x208   :  { %v206_v44 = vsub.f32 1.0, %v717_v42 }
 0x272   :  { %v284_v22 = vpop.xlane.xlu0 %283 }
 0x273   :  { %vm285_vm6 = vcmp.eq.f32.partialorder %v282_v57, %v284_v22  ;;  %v290_v47 = vcvt.f32.s32 %v284_v22 }
 0x274   :  { %v286_v26 = vsel %vm285_vm6, %v281_v23, inf }
 0x275   :  { %287 = vmin.xlane.f32.xlu0 %v286_v26  ;;  %v291_v54 = vshll.u32 %v290_v47, 16 }
 0x276   :  { %v299_v28 = vpop.xlane.xlu1 %298 }
 0x277   :  { %v324_v31 = vpop.xlane.xlu0 %323  ;;  %vm300_vm7 = vcmp.eq.f32.partialorder %v297_v2, %v299_v28  ;;  %v305_v52 = vcvt.f32.s32 %v299_v28  ;;  %v375_v28 = vshrl.u32 %v77_v48, 7 }
 0x278   :  { %v301_v34 = vsel %vm300_vm7, %v296_v29, inf  ;;  %vm325_vm8 = vcmp.eq.f32.partialorder %v322_v5, %v324_v31  ;;  %v330_v55 = vcvt.f32.s32 %v324_v31 }
 0x279   :  { %302 = vmin.xlane.f32.xlu1 %v301_v34  ;;  %v326_v35 = vsel %vm325_vm8, %v321_v32, inf  ;;  %v306_v58 = vshll.u32 %v305_v52, 16 }
 0x27a   :  { %327 = vmin.xlane.f32.xlu0 %v326_v35  ;;  %v339_v37 = vpop.xlane.xlu1 %338  ;;  %v331_v62 = vshll.u32 %v330_v55, 16 }
 0x27b   :  { %vm340_vm9 = vcmp.eq.f32.partialorder %v337_v10, %v339_v37  ;;  %v345_v59 = vcvt.f32.s32 %v339_v37 }
 0x27c   :  { %v341_v40 = vsel %vm340_vm9, %v336_v38, inf }
 0x27d   :  { %342 = vmin.xlane.f32.xlu1 %v341_v40  ;;  %v346_v4 = vshll.u32 %v345_v59, 16  ;;  %v43_v59 = vld [vmem:[%s1022_s1] sm:$0xff] }
 0x284   :  { %v913_v46 = vpop.xlane.xlu0 %61 }
 0x285   :  { %718 = vrcp.f32 %v913_v46 }
 0x287   :  { %v915_v50 = vpop.xlane.xlu1 %64 }
 0x288   :  { %720 = vrcp.f32 %v915_v50 }
 0x28e   :  { %215 = vperm.xlu1 %689, %v207_v43  }
 0x28f   :  { %v719_v46 = vpop.eup %718 }
 0x290   :  { %210 = vperm.xlu0 %688, %v206_v44   ;;  %v67_v55 = vmul.f32 %v719_v46, %v897_v12 }
 0x292   :  { %v721_v50 = vpop.eup %720 }
 0x302   :  { %v288_v51 = vpop.xlane.xlu0 %287 }
 0x303   :  { %v289_v53 = vcvt.f32.s32 %v288_v51 }
 0x305   :  { %v292_v56 = vadd.s32 %v291_v54, %v289_v53 }
 0x306   :  { %v303_v57 = vpop.xlane.xlu1 %302 }
 0x307   :  { %v304_v60 = vcvt.f32.s32 %v303_v57  ;;  %v328_v61 = vpop.xlane.xlu0 %327  ;;  %v348_v1 = vmul.u32 9, %v292_v56  ;;  %v69_v57 = vmul.f32 %v721_v50, %v901_v14 }
 0x308   :  { %v329_v63 = vcvt.f32.s32 %v328_v61  ;;  %v940_v61 = vld [vmem:[%s1022_s1 + $0x8] sm:$0xff]  ;;  %s801_s1 = smov 2  }
 0x309   :  { %v307_v0 = vadd.s32 %v306_v58, %v304_v60  ;;  %v127_v60 = vmul.f32 0.5, %v43_v59  ;;  %v128_v12 = vmul.f32 0.5, %v940_v61 }
 0x30a   :  { %v332_v2 = vadd.s32 %v331_v62, %v329_v63  ;;  %v343_v3 = vpop.xlane.xlu1 %342 }
 0x30b   :  { %v344_v5 = vcvt.f32.s32 %v343_v3  ;;  %v349_v7 = vmul.u32 9, %v307_v0 }
 0x30c   :  { %v350_v6 = vadd.s32 %v348_v1, %v332_v2 }
 0x30d   :  { %v347_v8 = vadd.s32 %v346_v4, %v344_v5 }
 0x30e   :  { %v216_v9 = vpop.permute.xlu1 %215  ;;  %vm352_vm10 = vcmp.eq.s32.totalorder %v350_v6, %v887_v49 }
 0x30f   :  { %v351_v10 = vadd.s32 %v349_v7, %v347_v8  ;;  %v219_v11 = vmul.f32 %v715_v41, %v216_v9  ;;  %v659_v13 = vsel %vm352_vm10, 1.0, %v798_v45  ;;  %v211_v15 = vpop.permute.xlu0 %210 }
 0x310   :  { %vm358_vm11 = vcmp.gt.f32.partialorder %v659_v13, 0.5  ;;  %v218_v16 = vmul.f32 %v717_v42, %v211_v15 }
 0x311   :  { %vm353_vm12 = vcmp.eq.s32.totalorder %v351_v10, %v887_v49  ;;  %v360_v17 = vsel %vm358_vm11, %v211_v15, -1.0  ;;  %436 = vxpose.xlu0.b32.start.end [1/1] (short) (narrow) %v219_v11, 8 }
 0x312   :  { %v660_v18 = vsel %vm353_vm12, 1.0, %v798_v45  ;;  %v362_v19 = vrot.slane %v360_v17, 4  ;;  %404 = vxpose.xlu1.b32.start.end [1/1] (short) (narrow) %v218_v16, 8  ;;  %vm70_vm12 = vcmask 121856  }
 0x313   :  { %vm359_vm13 = vcmp.gt.f32.partialorder %v660_v18, 0.5  ;;  %v71_v56 = vsel %vm70_vm12, %v67_v55, -inf  ;;  %v74_v58 = vsel %vm70_vm12, %v69_v57, -inf }
 0x314   :  { %v361_v20 = vsel %vm359_vm13, %v216_v9, -1.0  ;;  %v363_v21 = vmax.f32 %v360_v17, %v362_v19 }
 0x315   :  { %v368_v22 = vrot.slane %v361_v20, 4 }
 0x316   :  { %v364_v23 = vrot.slane %v363_v21, 2 }
 0x317   :  { %v369_v24 = vmax.f32 %v361_v20, %v368_v22 }
 0x318   :  { %v365_v25 = vmax.f32 %v363_v21, %v364_v23 }
 0x319   :  { %v370_v26 = vrot.slane %v369_v24, 2 }
 0x31a   :  { %v366_v27 = vrot.slane %v365_v25, 1 }
 0x31b   :  { %v371_v29 = vmax.f32 %v369_v24, %v370_v26 }
 0x31c   :  { %v367_v30 = vmax.f32 %v365_v25, %v366_v27 }
 0x31d   :  { %v372_v31 = vrot.slane %v371_v29, 1 }
 0x31e   :  { %vm376_vm14 = vcmp.ge.f32.partialorder %v360_v17, %v367_v30 }
 0x31f   :  { %v373_v32 = vmax.f32 %v371_v29, %v372_v31  ;;  %v378_v33 = vsel %vm376_vm14, %v375_v28, 8 }
 0x320   :  { %v380_v34 = vrot.slane %v378_v33, 4 }
 0x321   :  { %vm377_vm15 = vcmp.ge.f32.partialorder %v361_v20, %v373_v32  ;;  %v655_v20 = vld [vmem:[%s1023_s2] ss:$0 sm:$0xff] }
 0x322   :  { %v379_v35 = vsel %vm377_vm15, %v375_v28, 8  ;;  %vm381_vm1 = vcmp.lt.s32.totalorder %v378_v33, %v380_v34 }
 0x323   :  { %v389_v36 = vrot.slane %v379_v35, 4  ;;  %v382_v37 = vsel %vm381_vm1, %v378_v33, %v380_v34  ;;  %vm150_vm1 = vcmask 15360  }
 0x324   :  { %v383_v38 = vrot.slane %v382_v37, 2 }
 0x325   :  { %vm390_vm2 = vcmp.lt.s32.totalorder %v379_v35, %v389_v36 }
 0x326   :  { %v391_v39 = vsel %vm390_vm2, %v379_v35, %v389_v36  ;;  %vm384_vm3 = vcmp.lt.s32.totalorder %v382_v37, %v383_v38  ;;  %vm153_vm2 = vcmask 23552   ;;  %v656_v35 = vld [vmem:[%s1023_s2 + $0x1] ss:$0 sm:$0xff] }
 0x327   :  { %v392_v40 = vrot.slane %v391_v39, 2  ;;  %v385_v48 = vsel %vm384_vm3, %v382_v37, %v383_v38 }
 0x328   :  { %v386_v41 = vrot.slane %v385_v48, 1 }
 0x329   :  { %vm393_vm4 = vcmp.lt.s32.totalorder %v391_v39, %v392_v40 }
 0x32a   :  { %vm387_vm5 = vcmp.lt.s32.totalorder %v385_v48, %v386_v41  ;;  %v394_v42 = vsel %vm393_vm4, %v391_v39, %v392_v40 }
 0x32b   :  { %v388_v43 = vsel %vm387_vm5, %v385_v48, %v386_v41  ;;  %v395_v44 = vrot.slane %v394_v42, 1 }
 0x32c   :  { %vm398_vm6 = vcmp.eq.s32.totalorder %v375_v28, %v388_v43 }
 0x32d   :  { %vm400_vm7 = vmand %vm398_vm6, %vm358_vm11  ;;  %vm396_vm8 = vcmp.lt.s32.totalorder %v394_v42, %v395_v44  ;;  %vm799_vm11 = vmmov 0  }
 0x32e   :  { %v402_v47 = vsel %vm400_vm7, 1.0, %v798_v45  ;;  %v397_v51 = vsel %vm396_vm8, %v394_v42, %v395_v44  ;;  %674 = vmatprep.mubr.msk.f32.mxu1 %vm799_vm11, %v798_v45  ;;  %669 = vmatprep.mubr.msk.f32.mxu0 %vm799_vm11, %v798_v45 }
 0x32f   :  { %v468_v52 = vadd.f32 %v659_v13, %v402_v47  ;;  %vm399_vm9 = vcmp.eq.s32.totalorder %v375_v28, %v397_v51 }
 0x330   :  { %vm401_vm10 = vmand %vm399_vm9, %vm359_vm13 }
 0x331   :  { %668 = vmatpush3.msra.mxu0 %v468_v52  ;;  %v403_v53 = vsel %vm401_vm10, 1.0, %v798_v45 }
 0x332   :  { %v469_v54 = vadd.f32 %v660_v18, %v403_v53 }
 0x334   :  { %673 = vmatpush3.msra.mxu1 %v469_v54 }
 0x339   :  { %72 = vmax.xlane.f32.xlu1 %v71_v56 }
 0x33e   :  { %75 = vmax.xlane.f32.xlu0 %v74_v58 }
 0x34a   :  { %131 = vrot.lane.b32.xlu1 %v127_v60, %s800_s27 }
 0x34e   :  { %133 = vrot.lane.b32.xlu1 %v128_v12, %s800_s27 }
 0x391   :  { %v452_v14 = vpop.trf.xlu0 }
 0x392   :  { %v420_v62 = vpop.trf.xlu1  ;;  %675 = vmatmul.mubr.msk.f32.vlgmr.msra.gmra.mrb[0].mxu1 %vm189_vm0, %v452_v14 }
 0x393   :  { %670 = vmatmul.mubr.msk.f32.vlgmr.msra.gmra.mrb[0].mxu0 %vm189_vm0, %v420_v62 }
 0x3c6   :  { %v947_v63 = vpop.xlane.xlu1 %72 }
 0x3c7   :  { %vm79_vm13 = vcmp.ge.f32.partialorder %v67_v55, %v947_v63 }
 0x3c8   :  { %v81_v0 = vsel %vm79_vm13, %v887_v49, 15 }
 0x3c9   :  { %v83_v1 = vsel %vm70_vm12, %v81_v0, 2147483647 }
 0x3ca   :  { %v85_v2 = vshra.s32 %v83_v1, 16  ;;  %v132_v9 = vpop.permute.xlu1 %131  ;;  %v84_v15 = vand.u32 65535, %v83_v1 }
 0x3cb   :  { %v952_v3 = vpop.xlane.xlu0 %75  ;;  %v139_v10 = vadd.f32 %v132_v9, %v43_v59  ;;  %v137_v19 = vsub.f32 %v43_v59, %v132_v9 }
 0x3cc   :  { %vm80_vm14 = vcmp.ge.f32.partialorder %v69_v57, %v952_v3  ;;  %v87_v4 = vcvt.s32.f32 %v85_v2  ;;  %v86_v17 = vcvt.s32.f32 %v84_v15 }
 0x3cd   :  { %v82_v5 = vsel %vm80_vm14, %v887_v49, 15 }
 0x3ce   :  { %88 = vmin.xlane.f32.xlu1 %v87_v4  ;;  %v98_v6 = vsel %vm70_vm12, %v82_v5, 2147483647  ;;  %v134_v11 = vpop.permute.xlu1 %133 }
 0x3cf   :  { %v100_v7 = vshra.s32 %v98_v6, 16  ;;  %v140_v13 = vadd.f32 %v134_v11, %v940_v61  ;;  %v99_v29 = vand.u32 65535, %v98_v6  ;;  %v138_v33 = vsub.f32 %v940_v61, %v134_v11 }
 0x3d1   :  { %v102_v8 = vcvt.s32.f32 %v100_v7  ;;  %v101_v30 = vcvt.s32.f32 %v99_v29 }
 0x3d3   :  { %103 = vmin.xlane.f32.xlu0 %v102_v8 }
 0x3e9   :  { %143 = vrot.lane.b32.xlu0 %v139_v10, %s801_s1 }
 0x3ed   :  { %145 = vrot.lane.b32.xlu0 %v140_v13, %s801_s1 }
 0x45b   :  { %v89_v16 = vpop.xlane.xlu1 %88 }
 0x45c   :  { %vm90_vm15 = vcmp.eq.f32.partialorder %v87_v4, %v89_v16 }
 0x45d   :  { %v91_v18 = vsel %vm90_vm15, %v86_v17, inf }
 0x45e   :  { %92 = vmin.xlane.f32.xlu0 %v91_v18 }
 0x460   :  { %v958_v49 = vpop.xlane.xlu0 %103 }
 0x461   :  { %vm105_vm3 = vcmp.eq.f32.partialorder %v102_v8, %v958_v49 }
 0x462   :  { %v106_v31 = vsel %vm105_vm3, %v101_v30, inf }
 0x464   :  { %v144_v21 = vpop.permute.xlu0 %143 }
 0x465   :  { %v151_v22 = vsel %vm150_vm1, %v137_v19, %v144_v21  ;;  %v612_v23 = vpop.f32.mrb[0].mxu1 }
 0x466   :  { %v154_v24 = vsel %vm153_vm2, %v151_v22, %v144_v21  ;;  %617 = vst [vmem:[#allocation6 + $0x8] sm:$0xff] %v612_v23  ;;  %v676_v25 = vpop.f32.mrb[1].mxu1  ;;  %v539_v26 = vpop.f32.mrb[0].mxu0 }
 0x467   :  { %v168_v27 = vmul.f32 %v655_v20, %v154_v24  ;;  %616 = vst [vmem:[#allocation6] sm:$0xff] %v539_v26  ;;  %v671_v28 = vpop.f32.mrb[1].mxu0 }
 0x468   :  { %v146_v32 = vpop.permute.xlu0 %145 }
 0x469   :  { %174 = vrot.lane.b32.xlu1 %v168_v27, %s802_s30  ;;  %v152_v34 = vsel %vm150_vm1, %v138_v33, %v146_v32 }
 0x46a   :  { %v155_v36 = vsel %vm153_vm2, %v152_v34, %v146_v32 }
 0x46b   :  { %v169_v37 = vmul.f32 %v656_v35, %v155_v36 }
 0x48d   :  { %107 = vmin.xlane.f32.xlu1 %v106_v31 }
 0x49e   :  { %176 = vrot.lane.b32.xlu1 %v169_v37, %s802_s30 }
 0x49f   :  { %755 = shalt.err (!%p752_p12)
}
 0x4a0   :  { %s756_s17 = scalar_lea.hbm %s1028_s7, 256 }
 0x4a1   :  { %p757_p13 = scmp.ne.s32.totalorder %s1028_s7, %s756_s17  ;;  %p760_p0 = scmp.lt.u32.totalorder %s756_s17, %s1028_s7 }
 0x4a3   :  { %p762_p1 = pnand %p760_p0, %p757_p13 }
 0x4a5   :  { %765 = shalt.err (!%p762_p1)
}
 0x4a6   :  { %641 = dma.vmem_to_hbm [thread:$0]  %s636_s13, 256, %s1028_s7, [#allocation7], %s795_s11, %s795_s11, %s796_s12   ;;  %v95_v38 = vcvt.f32.s32 %v89_v16  ;;  %vm149_vm4 = vcmask 7168   ;;  %vm115_vm5 = vcmp.gt.f32.partialorder %v947_v63, 0.0  ;;  %vm186_vm8 = vcmask 31744  }
 0x4a7   :  { %v653_v47 = vsel %vm115_vm5, 1.0, %v798_v45  ;;  %v110_v54 = vcvt.f32.s32 %v958_v49  ;;  %vm116_vm9 = vcmp.gt.f32.partialorder %v952_v3, 0.0  ;;  %s804_s7 = smov [#allocation5]  }
 0x4a8   :  { %v96_v40 = vshll.u32 %v95_v38, 16  ;;  %s623_s0 = sshll.u32 %s804_s7, 4  ;;  %v654_v61 = vsel %vm116_vm9, 1.0, %v798_v45  ;;  %s624_s0 = int_to_ptr.vmem [resolvable:$true] %s623_s0 }
 0x4a9   :  { %v111_v50 = vshll.u32 %v110_v54, 16  ;;  %s766_s21 = scalar_lea.vmem %s624_s0, 256  ;;  %p771_p3 = scmp.lt.s32.totalorder %s624_s0, %s624_s0 }
 0x4aa   :  { %p767_p2 = scmp.ne.s32.totalorder %s624_s0, %s766_s21  ;;  %p772_p4 = scmp.lt.s32.totalorder %s766_s21, %s766_s21 }
 0x4ac   :  { %p773_p5 = por %p772_p4, %p771_p3 }
 0x4ae   :  { %p774_p6 = pnand %p773_p5, %p767_p2 }
 0x4db   :  { %v175_v52 = vpop.permute.xlu1 %174 }
 0x4eb   :  { %v93_v39 = vpop.xlane.xlu0 %92 }
 0x4ec   :  { %v94_v48 = vcvt.f32.s32 %v93_v39 }
 0x4ee   :  { %v97_v41 = vadd.s32 %v96_v40, %v94_v48 }
 0x4f0   :  { %vm113_vm6 = vcmp.eq.s32.totalorder %v97_v41, 1  ;;  %v170_v42 = vcvt.s32.f32 %v97_v41 }
 0x4f1   :  { %vm117_vm7 = vmand %vm113_vm6, %vm115_vm5 }
 0x4f2   :  { %v651_v43 = vsel %vm117_vm7, 1.0, %v798_v45  ;;  %v180_v44 = vsel %vm149_vm4, %v947_v63, %v170_v42 }
 0x4f3   :  { %v182_v51 = vsel %vm150_vm1, %v180_v44, %v651_v43 }
 0x4f4   :  { %v184_v46 = vsel %vm153_vm2, %v182_v51, %v653_v47 }
 0x4f5   :  { %v187_v53 = vsel %vm186_vm8, %v184_v46, %v175_v52 }
 0x4f6   :  { %190 = vst.msk [vmem:[#allocation5] sm:$0xff] %vm189_vm0, %v187_v53 }
 0x51a   :  { %v108_v55 = vpop.xlane.xlu1 %107 }
 0x51b   :  { %v109_v56 = vcvt.f32.s32 %v108_v55 }
 0x51d   :  { %v112_v57 = vadd.s32 %v111_v50, %v109_v56 }
 0x51e   :  { %v177_v62 = vpop.permute.xlu1 %176 }
 0x51f   :  { %vm114_vm10 = vcmp.eq.s32.totalorder %v112_v57, 1  ;;  %v171_v58 = vcvt.s32.f32 %v112_v57 }
 0x520   :  { %vm118_vm12 = vmand %vm114_vm10, %vm116_vm9 }
 0x521   :  { %v652_v59 = vsel %vm118_vm12, 1.0, %v798_v45  ;;  %v181_v60 = vsel %vm149_vm4, %v952_v3, %v171_v58 }
 0x522   :  { %v183_v12 = vsel %vm150_vm1, %v181_v60, %v652_v59 }
 0x523   :  { %v185_v14 = vsel %vm153_vm2, %v183_v12, %v654_v61 }
 0x524   :  { %v188_v63 = vsel %vm186_vm8, %v185_v14, %v177_v62 }
 0x525   :  { %191 = vst.msk [vmem:[#allocation5 + $0x8] sm:$0xff] %vm189_vm0, %v188_v63 }
 0x526   :  { %777 = shalt.err (!%p774_p6)
}
 0x527   :  { %s778_s3 = scalar_lea.hbm %s1027_s6, 256 }
 0x528   :  { %p779_p7 = scmp.ne.s32.totalorder %s1027_s6, %s778_s3  ;;  %p782_p8 = scmp.lt.u32.totalorder %s778_s3, %s1027_s6 }
 0x52a   :  { %p784_p9 = pnand %p782_p8, %p779_p7 }
 0x52c   :  { %787 = shalt.err (!%p784_p9)
}
 0x52d   :  { %629 = dma.vmem_to_hbm [thread:$0]  %s624_s0, 256, %s1027_s6, [#allocation4], %s795_s11, %s795_s11, %s796_s12  }
 0x52e   :  { %790 = dma.done.wait [#allocation4], 256  }
 0x52f   :  { %791 = vsyncadd [#allocation4], 4294967040 }
 0x530   :  { %792 = dma.done.wait [#allocation7], 256  }
 0x531   :  { %793 = vsyncadd [#allocation7], 4294967040 }
 0x532   :  { %648 = vsyncpa [#allocation3], 1 }
 0x533   :  { %649 = vsyncpa [#allocation4], 1 }
 0x534   :  { %650 = vsyncpa [#allocation7], 1 }

</bundles_post_ra>
